<compile_context>
chip_gen: v7x
topology: tpu7x:2x2x1
jax: 0.10.0
libtpu: 0.0.40
codegen_flags: <defaults>
</compile_context>

<pallas_src>
from functools import partial

import jax
import jax.numpy as jnp
from jax.experimental import pallas as pl
from jax.experimental.pallas import tpu as pltpu

FILTER_INPUT_RANGE = 5.0

# Double-buffered img+mask blocks plus ~10 full-tile f32 temporaries
# (r/g/b upcasts, lum, iota, ii/jj, inp, mask) must fit this working set.
_WORKING_SET_BUDGET = 24 * 1024 * 1024


def _round_up(x, m):
    return ((x + m - 1) // m) * m


def _vmem_limit_bytes():
    # v5e's scoped-VMEM default is only 16 MiB, which the enlarged
    # double-buffered tiles would exceed; 48 MiB is safely below physical
    # VMEM on every generation (v5e/v6e: 128 MiB, v7x: 64 MiB).
    limit = 48 * 1024 * 1024
    try:
        cap = int(pltpu.get_tpu_info().vmem_capacity_bytes)
        limit = min(limit, (cap * 3) // 4)
    except Exception:
        pass
    return limit


# ---------------------------------------------------------------------------
# Pallas kernel: one (batch, row-block) tile of the mask
# ---------------------------------------------------------------------------
def _mask_kernel(coef_ref, img_ref, out_ref, *, W, minimum_strength, flat, row_block):
    # coef_ref: SMEM (B, 5)  folded per-batch coefficients (grid-resident)
    #           [c_ii, c_jj, c_lum, c_bias, gain]
    # img_ref : VMEM (1, 3, S0, S1)  image block (native dtype)
    # out_ref : VMEM (1, S0, S1)     mask block
    b = pl.program_id(0)
    t = pl.program_id(1)

    c_i = coef_ref[b, 0]
    c_j = coef_ref[b, 1]
    c_lum = coef_ref[b, 2]
    c_bias = coef_ref[b, 3]
    gain = coef_ref[b, 4]

    # rgb2lum: 0.27 R + 0.67 G + 0.06 B (cast to f32 in-kernel; free VPU work)
    r = img_ref[0, 0].astype(jnp.float32)
    g = img_ref[0, 1].astype(jnp.float32)
    bl = img_ref[0, 2].astype(jnp.float32)
    lum = 0.27 * r + 0.67 * g + 0.06 * bl                    # (S0, S1)

    s0, s1 = lum.shape
    i0 = jax.lax.broadcasted_iota(jnp.int32, (s0, s1), 0)
    i1 = jax.lax.broadcasted_iota(jnp.int32, (s0, s1), 1)
    row_off = t * row_block                                   # scalar int32

    if flat:
        # Flat (lane-dense) layout: recover (ii, jj) from the global flat
        # pixel index via f32 divide+floor with a rounding guard.
        flat_idx = ((i0 + row_off) * s1 + i1).astype(jnp.float32)
        w_f = float(W)
        ii = jnp.floor(flat_idx * (1.0 / w_f))
        jj = flat_idx - ii * w_f
        ii = jnp.where(jj < 0.0, ii - 1.0, jnp.where(jj >= w_f, ii + 1.0, ii))
        jj = flat_idx - ii * w_f
    else:
        ii = (i0 + row_off).astype(jnp.float32)
        jj = i1.astype(jnp.float32)

    # All per-batch scalar algebra was folded into the coefficients.
    inp = ii * c_i + jj * c_j + lum * c_lum + c_bias
    mask = jax.nn.sigmoid(inp)
    out_ref[0] = (mask * gain + minimum_strength).astype(out_ref.dtype)


def _pick_row_block(n_rows, lane_pad, in_itemsize, out_itemsize, budget):
    """Largest multiple-of-8 row block whose double-buffered working set
    (image + mask blocks + ~10 f32 full-tile temporaries) fits the budget."""
    per_row = lane_pad * (3 * in_itemsize * 2 + out_itemsize * 2 + 10 * 4)
    blk = max(8, budget // per_row)
    blk = (blk // 8) * 8
    if blk >= n_rows:
        return n_rows            # single full-extent block (any n_rows)
    return blk


def get_mask_pallas(img, mask_parameters, *, maximum_sharpness, minimum_strength,
                    out_dtype=jnp.bfloat16, compute_input_dtype=None,
                    row_block=None):
    B, C, H, W = img.shape
    assert C == 3, "rgb2lum expects 3 channels"
    assert mask_parameters.shape == (B, 6)

    if compute_input_dtype is not None and img.dtype != compute_input_dtype:
        # NOTE: only a net win if this cast fuses with the producer of `img`
        # (or the image is reused); as a standalone XLA op it is an extra
        # HBM pass over the image.
        img = img.astype(compute_input_dtype)

    # tanh_range(l=-5, r=5, initial=0): bias = atanh(0) = 0  =>  5 * tanh(x)
    p = FILTER_INPUT_RANGE * jnp.tanh(mask_parameters.astype(jnp.float32))
    sharp = maximum_sharpness * p[:, 4] / FILTER_INPUT_RANGE
    shorter = float(min(H, W))
    # Fold the grid normalisation ((i+off)/shorter - 0.5), the (lum - 0.5)
    # and 2*p3 terms, and the sharpness scale into per-batch coefficients:
    #   inp  = ii*c_i + jj*c_j + lum*c_lum + c_bias
    #   mask = sigmoid(inp) * gain + minimum_strength
    c_i = p[:, 0] * sharp / shorter
    c_j = p[:, 1] * sharp / shorter
    c_lum = p[:, 2] * sharp
    c_bias = (p[:, 0] * ((shorter - H) * 0.5 / shorter - 0.5)
              + p[:, 1] * ((shorter - W) * 0.5 / shorter - 0.5)
              - 0.5 * p[:, 2] + 2.0 * p[:, 3]) * sharp
    gain = (p[:, 5] / FILTER_INPUT_RANGE * 0.5 + 0.5) * (1.0 - minimum_strength)
    coefs = jnp.stack([c_i, c_j, c_lum, c_bias, gain], axis=1)   # (B, 5) f32

    F = H * W
    in_itemsize = jnp.dtype(img.dtype).itemsize
    out_itemsize = jnp.dtype(out_dtype).itemsize

    flat = (F % 128 == 0)
    if flat:
        R = F // 128
        n_rows, lane_w, lane_pad = R, 128, 128
        img_k = img.reshape(B, 3, R, 128)        # contiguous reshape: free
    else:
        # 2-D fallback (W not lane-aligned): lane efficiency = W/roundup(W,128).
        n_rows, lane_w, lane_pad = H, W, _round_up(W, 128)
        img_k = img

    if row_block is None:
        blk = _pick_row_block(n_rows, lane_pad, in_itemsize, out_itemsize,
                              _WORKING_SET_BUDGET)
        n_tiles = pl.cdiv(n_rows, blk)
        # Guarantee >=2 grid steps so both v7x TensorCores get work.
        if B * n_tiles < 2 and n_rows >= 16:
            blk = _round_up(pl.cdiv(n_rows, 2), 8)
            n_tiles = pl.cdiv(n_rows, blk)
    else:
        blk = min(row_block, n_rows)
        assert blk == n_rows or blk % 8 == 0, \
            "row_block must be the full row extent or a multiple of 8"
        n_tiles = pl.cdiv(n_rows, blk)

    if flat:
        in_block = (1, 3, blk, 128)
        out_block = (1, blk, 128)
        out_shape = jax.ShapeDtypeStruct((B, R, 128), out_dtype)
    else:
        in_block = (1, 3, blk, W)
        out_block = (1, blk, W)
        out_shape = jax.ShapeDtypeStruct((B, H, W), out_dtype)

    kernel = partial(_mask_kernel, W=W, minimum_strength=float(minimum_strength),
                     flat=flat, row_block=blk)

    bytes_accessed = int(B * F * (3 * in_itemsize + out_itemsize) + coefs.size * 4)
    cost = pl.CostEstimate(flops=int(16 * B * F),
                           transcendentals=int(B * F),
                           bytes_accessed=bytes_accessed)

    out = pl.pallas_call(
        kernel,
        out_shape=out_shape,
        grid=(B, n_tiles),
        in_specs=[
            # Whole coefficient table as one grid-resident SMEM block: the
            # block index never changes, so it is DMA'd once for the grid.
            pl.BlockSpec((B, 5), lambda b, t: (0, 0), memory_space=pltpu.SMEM),
            pl.BlockSpec(in_block, lambda b, t: (b, 0, t, 0)),
        ],
        out_specs=pl.BlockSpec(out_block, lambda b, t: (b, t, 0)),
        compiler_params=pltpu.CompilerParams(
            dimension_semantics=("parallel", "parallel"),
            vmem_limit_bytes=_vmem_limit_bytes()),
        cost_estimate=cost,
    )(coefs, img_k)

    mask = out.reshape(B, H, W) if flat else out
    # PyTorch mask layout is (B, H, W, 1); keep the unit channel OUTSIDE the
    # kernel so the kernel's output lane dim stays dense.
    return mask[..., None]


def get_mask_ref(img, mask_parameters, *, maximum_sharpness, minimum_strength):
    """Pure-JAX reference (mirrors the PyTorch math exactly) for validation."""
    B, C, H, W = img.shape
    p = FILTER_INPUT_RANGE * jnp.tanh(mask_parameters.astype(jnp.float32))
    shorter = float(min(H, W))
    i = jnp.arange(H, dtype=jnp.float32)[:, None]
    j = jnp.arange(W, dtype=jnp.float32)[None, :]
    g0 = jnp.broadcast_to((i + (shorter - H) / 2.0) / shorter - 0.5, (H, W))
    g1 = jnp.broadcast_to((j + (shorter - W) / 2.0) / shorter - 0.5, (H, W))
    lum = 0.27 * img[:, 0] + 0.67 * img[:, 1] + 0.06 * img[:, 2]   # (B,H,W)
    inp = (g0[None] * p[:, 0, None, None]
           + g1[None] * p[:, 1, None, None]
           + p[:, 2, None, None] * (lum - 0.5)
           + p[:, 3, None, None] * 2.0)
    inp = inp * (maximum_sharpness * p[:, 4, None, None] / FILTER_INPUT_RANGE)
    mask = jax.nn.sigmoid(inp)
    mask = (mask * (p[:, 5, None, None] / FILTER_INPUT_RANGE * 0.5 + 0.5)
            * (1.0 - minimum_strength) + minimum_strength)
    return mask[..., None]


# ---------------------------------------------------------------------------
# Module glue (mirrors the PyTorch base class)
# ---------------------------------------------------------------------------
class Config:
    def __init__(self, masking=True, maximum_sharpness=1.0, minimum_strength=0.05,
                 mask_dtype=jnp.bfloat16):
        self.masking = masking
        self.maximum_sharpness = maximum_sharpness
        self.minimum_strength = minimum_strength
        # bf16 halves mask HBM traffic; set to jnp.float32 to match PyTorch
        # precision exactly.
        self.mask_dtype = mask_dtype


class Filters:
    def __init__(self, cfg, num_filter_parameters=6, begin_filter_parameter=0):
        self.cfg = cfg
        self.num_filter_parameters = num_filter_parameters
        self.begin_filter_parameter = begin_filter_parameter
        self.short_name = "base"

    def get_num_filter_parameters(self):
        assert self.num_filter_parameters is not None
        return self.num_filter_parameters

    def get_num_mask_parameters(self):
        return 6

    def extract_parameters(self, features):
        b = self.begin_filter_parameter
        n = self.get_num_filter_parameters()
        return features[:, b:b + n], features[:, b:b + n]

    def use_masking(self):
        return self.cfg.masking

    def get_mask(self, img, mask_parameters):
        if not self.use_masking():
            return jnp.ones((1, 1, 1, 1), dtype=jnp.float32)
        assert mask_parameters.shape[1] == self.get_num_mask_parameters()
        return get_mask_pallas(
            img, mask_parameters,
            maximum_sharpness=self.cfg.maximum_sharpness,
            minimum_strength=self.cfg.minimum_strength,
            out_dtype=self.cfg.mask_dtype)

    def filter_param_regressor(self, features):
        # TODO(synk): abstract in base class (assert False); subclasses define it.
        return features

    def process(self, img, param):
        # TODO(synk): abstract in base class (assert False); identity passthrough here.
        return img

    def forward(self, img, img_features=None, specified_parameter=None):
        assert (img_features is None) ^ (specified_parameter is None), "Error"
        if img_features is not None:
            filter_features, mask_parameters = self.extract_parameters(img_features)
            filter_parameters = self.filter_param_regressor(filter_features)
        else:
            assert not self.use_masking()
            filter_parameters = specified_parameter
            mask_parameters = jnp.zeros((1, self.get_num_filter_parameters()),
                                        dtype=jnp.float32)
        low_res_output = self.process(img, filter_parameters)
        return low_res_output, filter_parameters


if __name__ == "__main__":
    key = jax.random.PRNGKey(0)
    keys = jax.random.split(key, 8)

    # --- 1. Small shape from the module spec: (B=2, C=3, 16x16), f32 mask ---
    B, C, H, W = 2, 3, 16, 16
    img = jax.random.uniform(keys[0], (B, C, H, W), dtype=jnp.float32)
    mp = jax.random.normal(keys[1], (B, 6), dtype=jnp.float32)
    mask = get_mask_pallas(img, mp, maximum_sharpness=1.0, minimum_strength=0.05,
                           out_dtype=jnp.float32)
    mask = jax.block_until_ready(mask)
    ref = get_mask_ref(img, mp, maximum_sharpness=1.0, minimum_strength=0.05)
    assert mask.shape == (B, H, W, 1)
    assert jnp.allclose(mask, ref, atol=2e-4, rtol=2e-4)

    # --- 2. Default module path (bf16 mask output) ---
    cfg = Config(masking=True, maximum_sharpness=1.0, minimum_strength=0.05)
    filt = Filters(cfg)
    mask_bf16 = jax.block_until_ready(filt.get_mask(img, mp))
    assert mask_bf16.dtype == jnp.bfloat16 and mask_bf16.shape == (B, H, W, 1)
    assert jnp.allclose(mask_bf16.astype(jnp.float32), ref, atol=1e-2, rtol=1e-2)

    # --- 3. Flat lane-dense path, multiple row blocks + ragged tail, bf16 I/O ---
    B3, H3, W3 = 1, 100, 128                      # F=12800 -> R=100, blocks of 32
    img3 = jax.random.uniform(keys[2], (B3, 3, H3, W3), dtype=jnp.float32)
    img3b = img3.astype(jnp.bfloat16)
    mp3 = jax.random.normal(keys[3], (B3, 6), dtype=jnp.float32)
    mask3 = jax.block_until_ready(
        get_mask_pallas(img3b, mp3, maximum_sharpness=1.0, minimum_strength=0.05,
                        out_dtype=jnp.bfloat16, row_block=32))
    ref3 = get_mask_ref(img3, mp3, maximum_sharpness=1.0, minimum_strength=0.05)
    assert jnp.allclose(mask3.astype(jnp.float32), ref3, atol=2e-2, rtol=2e-2)

    # --- 4. 2-D fallback path (W not lane-aligned) with ragged H tiling ---
    B4, H4, W4 = 1, 40, 72                        # F=2880 not /128 -> 2-D path
    img4 = jax.random.uniform(keys[4], (B4, 3, H4, W4), dtype=jnp.float32)
    mp4 = jax.random.normal(keys[5], (B4, 6), dtype=jnp.float32)
    mask4 = jax.block_until_ready(
        get_mask_pallas(img4, mp4, maximum_sharpness=1.0, minimum_strength=0.05,
                        out_dtype=jnp.float32, row_block=16))   # 40 = 16+16+8
    ref4 = get_mask_ref(img4, mp4, maximum_sharpness=1.0, minimum_strength=0.05)
    assert jnp.allclose(mask4, ref4, atol=2e-4, rtol=2e-4)

    # --- 5. Auto block picker + megacore split (B=1 -> forced 2 grid steps) ---
    B5, H5, W5 = 1, 128, 128
    img5 = jax.random.uniform(keys[6], (B5, 3, H5, W5), dtype=jnp.float32)
    mp5 = jax.random.normal(keys[7], (B5, 6), dtype=jnp.float32)
    mask5 = jax.block_until_ready(
        get_mask_pallas(img5, mp5, maximum_sharpness=1.0, minimum_strength=0.05,
                        out_dtype=jnp.float32))
    ref5 = get_mask_ref(img5, mp5, maximum_sharpness=1.0, minimum_strength=0.05)
    assert jnp.allclose(mask5, ref5, atol=2e-4, rtol=2e-4)

    # --- 6. Masking-disabled forward path (base-class control flow) ---
    cfg_nomask = Config(masking=False)
    filt2 = Filters(cfg_nomask, num_filter_parameters=6)
    specified = jax.random.normal(keys[1], (B, 6), dtype=jnp.float32)
    low_res, params_out = filt2.forward(img, specified_parameter=specified)
    jax.block_until_ready(low_res)

    print("KERNEL_OK")
</pallas_src>

<mosaic_0001>
module attributes {stable_mosaic.version = 11 : i64} {
  func.func @_mask_kernel(%arg0: i32, %arg1: i32, %arg2: memref<2x5xf32, #tpu.memory_space<smem>>, %arg3: memref<1x3x2x128xf32, #tpu.memory_space<vmem>>, %arg4: memref<1x2x128xf32, #tpu.memory_space<vmem>>) attributes {dimension_semantics = [#tpu.dimension_semantics<parallel>, #tpu.dimension_semantics<parallel>], iteration_bounds = array<i64: 2, 1>, scalar_prefetch = 0 : i64, scratch_operands = 0 : i64, tpu.core_type = #tpu.core_type<tc>, window_params = [{transform_indices = @transform_0, window_bounds = array<i64: 2, 5>}, {transform_indices = @transform_1, window_bounds = array<i64: 1, 3, 2, 128>}, {transform_indices = @transform_2, window_bounds = array<i64: 1, 2, 128>}]} {
    %0 = arith.index_cast %arg0 : i32 to index
    %c0 = arith.constant 0 : index
    %1 = memref.load %arg2[%0, %c0] : memref<2x5xf32, #tpu.memory_space<smem>>
    %2 = arith.index_cast %arg0 : i32 to index
    %c1 = arith.constant 1 : index
    %3 = memref.load %arg2[%2, %c1] : memref<2x5xf32, #tpu.memory_space<smem>>
    %4 = arith.index_cast %arg0 : i32 to index
    %c2 = arith.constant 2 : index
    %5 = memref.load %arg2[%4, %c2] : memref<2x5xf32, #tpu.memory_space<smem>>
    %6 = arith.index_cast %arg0 : i32 to index
    %c3 = arith.constant 3 : index
    %7 = memref.load %arg2[%6, %c3] : memref<2x5xf32, #tpu.memory_space<smem>>
    %8 = arith.index_cast %arg0 : i32 to index
    %c4 = arith.constant 4 : index
    %9 = memref.load %arg2[%8, %c4] : memref<2x5xf32, #tpu.memory_space<smem>>
    %c0_0 = arith.constant 0 : index
    %c0_1 = arith.constant 0 : index
    %c0_2 = arith.constant 0 : index
    %c0_3 = arith.constant 0 : index
    %10 = vector.load %arg3[%c0_0, %c0_1, %c0_2, %c0_3] : memref<1x3x2x128xf32, #tpu.memory_space<vmem>>, vector<1x1x2x128xf32>
    %11 = vector.shape_cast %10 : vector<1x1x2x128xf32> to vector<2x128xf32>
    %c0_4 = arith.constant 0 : index
    %c1_5 = arith.constant 1 : index
    %c0_6 = arith.constant 0 : index
    %c0_7 = arith.constant 0 : index
    %12 = vector.load %arg3[%c0_4, %c1_5, %c0_6, %c0_7] : memref<1x3x2x128xf32, #tpu.memory_space<vmem>>, vector<1x1x2x128xf32>
    %13 = vector.shape_cast %12 : vector<1x1x2x128xf32> to vector<2x128xf32>
    %c0_8 = arith.constant 0 : index
    %c2_9 = arith.constant 2 : index
    %c0_10 = arith.constant 0 : index
    %c0_11 = arith.constant 0 : index
    %14 = vector.load %arg3[%c0_8, %c2_9, %c0_10, %c0_11] : memref<1x3x2x128xf32, #tpu.memory_space<vmem>>, vector<1x1x2x128xf32>
    %15 = vector.shape_cast %14 : vector<1x1x2x128xf32> to vector<2x128xf32>
    %cst = arith.constant 2.700000e-01 : f32
    %16 = vector.broadcast %cst : f32 to vector<2x128xf32>
    %17 = arith.mulf %16, %11 : vector<2x128xf32>
    %cst_12 = arith.constant 6.700000e-01 : f32
    %18 = vector.broadcast %cst_12 : f32 to vector<2x128xf32>
    %19 = arith.mulf %18, %13 : vector<2x128xf32>
    %20 = arith.addf %17, %19 : vector<2x128xf32>
    %cst_13 = arith.constant 6.000000e-02 : f32
    %21 = vector.broadcast %cst_13 : f32 to vector<2x128xf32>
    %22 = arith.mulf %21, %15 : vector<2x128xf32>
    %23 = arith.addf %20, %22 : vector<2x128xf32>
    %24 = tpu.iota {dimensions = array<i32: 0>} : vector<2x128xi32>
    %25 = tpu.iota {dimensions = array<i32: 1>} : vector<2x128xi32>
    %c2_i32 = arith.constant 2 : i32
    %26 = arith.muli %arg1, %c2_i32 : i32
    %27 = vector.broadcast %26 : i32 to vector<2x128xi32>
    %28 = arith.addi %24, %27 : vector<2x128xi32>
    %c128_i32 = arith.constant 128 : i32
    %29 = vector.broadcast %c128_i32 : i32 to vector<2x128xi32>
    %30 = arith.muli %28, %29 : vector<2x128xi32>
    %31 = arith.addi %30, %25 : vector<2x128xi32>
    %32 = arith.sitofp %31 : vector<2x128xi32> to vector<2x128xf32>
    %cst_14 = arith.constant 6.250000e-02 : f32
    %33 = vector.broadcast %cst_14 : f32 to vector<2x128xf32>
    %34 = arith.mulf %32, %33 : vector<2x128xf32>
    %35 = math.floor %34 : vector<2x128xf32>
    %cst_15 = arith.constant 1.600000e+01 : f32
    %36 = vector.broadcast %cst_15 : f32 to vector<2x128xf32>
    %37 = arith.mulf %35, %36 : vector<2x128xf32>
    %38 = arith.subf %32, %37 : vector<2x128xf32>
    %cst_16 = arith.constant 0.000000e+00 : f32
    %39 = vector.broadcast %cst_16 : f32 to vector<2x128xf32>
    %40 = arith.cmpf olt, %38, %39 : vector<2x128xf32>
    %cst_17 = arith.constant 1.000000e+00 : f32
    %41 = vector.broadcast %cst_17 : f32 to vector<2x128xf32>
    %42 = arith.subf %35, %41 : vector<2x128xf32>
    %cst_18 = arith.constant 1.600000e+01 : f32
    %43 = vector.broadcast %cst_18 : f32 to vector<2x128xf32>
    %44 = arith.cmpf oge, %38, %43 : vector<2x128xf32>
    %cst_19 = arith.constant 1.000000e+00 : f32
    %45 = vector.broadcast %cst_19 : f32 to vector<2x128xf32>
    %46 = arith.addf %35, %45 : vector<2x128xf32>
    %47 = arith.select %44, %46, %35 : vector<2x128xi1>, vector<2x128xf32>
    %48 = arith.select %40, %42, %47 : vector<2x128xi1>, vector<2x128xf32>
    %cst_20 = arith.constant 1.600000e+01 : f32
    %49 = vector.broadcast %cst_20 : f32 to vector<2x128xf32>
    %50 = arith.mulf %48, %49 : vector<2x128xf32>
    %51 = arith.subf %32, %50 : vector<2x128xf32>
    %52 = vector.broadcast %1 : f32 to vector<2x128xf32>
    %53 = arith.mulf %48, %52 : vector<2x128xf32>
    %54 = vector.broadcast %3 : f32 to vector<2x128xf32>
    %55 = arith.mulf %51, %54 : vector<2x128xf32>
    %56 = arith.addf %53, %55 : vector<2x128xf32>
    %57 = vector.broadcast %5 : f32 to vector<2x128xf32>
    %58 = arith.mulf %23, %57 : vector<2x128xf32>
    %59 = arith.addf %56, %58 : vector<2x128xf32>
    %60 = vector.broadcast %7 : f32 to vector<2x128xf32>
    %61 = arith.addf %59, %60 : vector<2x128xf32>
    %62 = arith.negf %61 : vector<2x128xf32>
    %63 = math.exp %62 : vector<2x128xf32>
    %cst_21 = arith.constant 1.000000e+00 : f32
    %64 = vector.broadcast %cst_21 : f32 to vector<2x128xf32>
    %65 = arith.addf %64, %63 : vector<2x128xf32>
    %66 = arith.divf %64, %65 : vector<2x128xf32>
    %67 = vector.broadcast %9 : f32 to vector<2x128xf32>
    %68 = arith.mulf %66, %67 : vector<2x128xf32>
    %cst_22 = arith.constant 5.000000e-02 : f32
    %69 = vector.broadcast %cst_22 : f32 to vector<2x128xf32>
    %70 = arith.addf %68, %69 : vector<2x128xf32>
    %c0_23 = arith.constant 0 : index
    %c0_24 = arith.constant 0 : index
    %c0_25 = arith.constant 0 : index
    %71 = vector.load %arg4[%c0_23, %c0_24, %c0_25] : memref<1x2x128xf32, #tpu.memory_space<vmem>>, vector<1x2x128xf32>
    %72 = vector.shape_cast %71 : vector<1x2x128xf32> to vector<2x128xf32>
    %73 = vector.shape_cast %70 : vector<2x128xf32> to vector<1x2x128xf32>
    tpu.vector_store %arg4[%c0_23, %c0_24, %c0_25], %73 {strides = array<i32>} : memref<1x2x128xf32, #tpu.memory_space<vmem>>, vector<1x2x128xf32>,
    return
  }
  func.func @transform_0(%arg0: i32, %arg1: i32) -> (i32, i32) {
    %c0_i32 = arith.constant 0 : i32
    %c0_i32_0 = arith.constant 0 : i32
    %c0_i32_1 = arith.constant 0 : i32
    return %c0_i32, %c0_i32_0 : i32, i32
  }
  func.func @transform_1(%arg0: i32, %arg1: i32) -> (i32, i32, i32, i32) {
    %c0_i32 = arith.constant 0 : i32
    %c0_i32_0 = arith.constant 0 : i32
    %c0_i32_1 = arith.constant 0 : i32
    return %arg0, %c0_i32, %arg1, %c0_i32_0 : i32, i32, i32, i32
  }
  func.func @transform_2(%arg0: i32, %arg1: i32) -> (i32, i32, i32) {
    %c0_i32 = arith.constant 0 : i32
    %c0_i32_0 = arith.constant 0 : i32
    return %arg0, %arg1, %c0_i32 : i32, i32, i32
  }
}

</mosaic_0001>

<bundles_post_ra>
// kernel: tpu_custom_call.1
= control target key start
LH: loop header
LB: loop body
LE: loop exit
PB: predicated region body
PF: predicated region fallthrough
CT: control target
= control target key end

     0   :  { %7 = vsyncpa [#allocation5], 0  ;;  %s820_s0 = inlined_call_operand.hbm [shape: f32[2,5], index: 0, kind: input, shape index: {}]   ;;  %s821_s1 = inlined_call_operand.hbm [shape: f32[2,3,2,128], index: 1, kind: input, shape index: {}]   ;;  %s822_s2 = inlined_call_operand.hbm [shape: f32[2,2,128], index: 2, kind: output, shape index: {}]  }
   0x1   :  { %8 = vsyncpa [#allocation3], 0 }
   0x2   :  { %10 = vsyncpa [#allocation3 + $0x1], 0 }
   0x3   :  { %11 = vsyncpa [#allocation4], 0 }
   0x4   :  { %13 = vsyncpa [#allocation4 + $0x1], 0  ;;  %s612_s9 = smov 0   ;;  %s614_s10 = smov 0  }
   0x5   :  { %s616_s11 = smov 0   ;;  %s618_s12 = smov 0  }
   0x6   :  { %s620_s13 = smov 0   ;;  %s622_s14 = smov 0  }
   0x7 LB: > { %s361_s15 = sadd.s32 4294967295, %s590_s14   ;;  %s362_s16 = sadd.s32 4294967294, %s590_s14   ;;  %s590_s14 = sphi %s622_s14, %s19_s14   ;;  %s586_s13 = sphi %s620_s13, %s842_s13   ;;  %s582_s12 = sphi %s618_s12, %s841_s12   ;;  %s578_s11 = sphi %s616_s11, %s840_s11   ;;  %s574_s10 = sphi %s614_s10, %s839_s10   ;;  %s570_s9 = sphi %s612_s9, %s838_s9  }
   0x8   : > { %s61_s17 = sadd.s32 1, %s578_s11  ;;  %p68_p0 = scmp.ne.s32.totalorder %s578_s11, %s574_s10 }
   0x9   : > { %p69_p1 = scmp.eq.s32.totalorder %s590_s14, 0  ;;  %p74_p2 = scmp.ne.s32.totalorder %s574_s10, %s570_s9 }
   0xa   : > { %p650_p3 = scmp.eq.s32.totalorder %s361_s15, 0  ;;  %p100_p4 = scmp.eq.s32.totalorder %s361_s15, 1 }
   0xb   : > { %p70_p5 = por %p69_p1, %p68_p0  ;;  %p106_p6 = scmp.eq.s32.totalorder %s362_s16, 1 }
   0xc   : > { %s827_s18 = scalar_select %p650_p3, 1, 0 }
   0xd   : > { %p656_p7 = por %p650_p3, %p74_p2  ;;  %p660_p8 = por %p100_p4, %p68_p0 }
   0xe   : > { %p664_p9 = por %p106_p6, %p74_p2  ;;  %p363_p10 = scmp.ge.s32.totalorder %s590_s14, 1 }
   0xf   : > { %s828_s19 = scalar_select %p656_p7, 1, 0 }
  0x10   : > { %s829_s20 = scalar_select %p660_p8, 1, 0 }
  0x11   : > { %s830_s21 = scalar_select %p664_p9, 1, 0 }
  0x12   : > { %p113_p11 = scmp.lt.s32.totalorder %s590_s14, 3  ;;  %p403_p1 = scmp.lt.s32.totalorder %s590_s14, 2 }
  0x13   : > { %s135_s23 = sand.u32 1, %s578_s11   ;;  %s31_s25 = sadd.s32 1, %s586_s13 }
  0x14   : > { %p671_p13 = pnand %p363_p10, %p113_p11  ;;  %p679_p0 = pnand %p403_p1, %p70_p5 }
  0x15   : > { %s379_s26 = smul.u32 6, %s135_s23  ;;  %p33_p4 = scmp.ge.s32.totalorder %s31_s25, 2 }
  0x16   : > { %p390_p7 = pneg %p671_p13  ;;  %s461_s29 = scalar_lea.hbm %s820_s0, 32 }
  0x17   : > { %p462_p6 = scmp.ne.s32.totalorder %s820_s0, %s461_s29  ;;  %p468_p5 = scmp.lt.u32.totalorder %s461_s29, %s820_s0 }
  0x18   : > { %p391_p2 = pnand %p390_p7, %p650_p3 }
  0x1a   : > { %p463_p10 = pneg %p391_p2 }
  0x1c   : > { %p464_p11 = pnand %p463_p10, %p462_p6 }
  0x1e   : > { %p465_p12 = pneg %p464_p11 }
  0x20   : > { %p470_p1 = pnand %p468_p5, %p465_p12 }
  0x22   : > { %473 = shalt.err (!%p470_p1)
}
  0x23   : > { %s592_s6 = smov [#allocation2]   ;;  %s844_s25 = smov (%p33_p4, %s31_s25), 0 }
  0x24   : > { %393 = dma.hbm_to_smem (!%p391_p2), %s820_s0, 32, %s592_s6, [#allocation5]  }
  0x25   : > { %s380_s15 = smul.u32 96, %s586_s13  ;;  %s56_s16 = ssub.s32 %s586_s13, %s844_s25 }
  0x26   : > { %s139_s27 = scalar_lea.vmem [#allocation6], %s379_s26  ;;  %p59_p7 = scmp.eq.s32.totalorder %s56_s16, 0 }
  0x27   : > { %s147_s28 = sshll.u32 %s139_s27, 4  ;;  %s706_s3 = scalar_lea.hbm %s821_s1, %s380_s15  ;;  %s708_s28 = int_to_ptr.vmem [resolvable:$true] %s147_s28 }
  0x28   : > { %s713_s4 = scalar_select %p59_p7, %s578_s11, %s61_s17  }
  0x29   : > { %s715_s5 = scalar_lea.sflag [#allocation3], %s135_s23  ;;  %s474_s6 = scalar_lea.hbm %s706_s3, 96 }
  0x2a   : > { %p475_p12 = scmp.ne.s32.totalorder %s706_s3, %s474_s6  ;;  %p476_p2 = pneg %p679_p0 }
  0x2b   : > { %s479_s8 = scalar_lea.hbm %s821_s1, 192  ;;  %p480_p10 = scmp.lt.u32.totalorder %s706_s3, %s821_s1 }
  0x2c   : > { %p477_p4 = pnand %p476_p2, %p475_p12  ;;  %p481_p11 = scmp.lt.u32.totalorder %s479_s8, %s474_s6 }
  0x2d   : > { %p483_p1 = scmp.lt.u32.totalorder %s474_s6, %s706_s3 }
  0x2e   : > { %p478_p6 = pneg %p477_p4  ;;  %p482_p5 = por %p481_p11, %p480_p10 }
  0x30   : > { %p484_p7 = por %p483_p1, %p482_p5 }
  0x32   : > { %p485_p9 = pnand %p484_p7, %p478_p6 }
  0x34   : > { %488 = shalt.err (!%p485_p9)
}
  0x35   : > { %s489_s17 = scalar_lea.vmem %s708_s28, 96  ;;  %s593_s23 = smov [#allocation6]  }
  0x36   : > { %p490_p12 = scmp.ne.s32.totalorder %s708_s28, %s489_s17  ;;  %s494_s27 = sshll.u32 %s593_s23, 4  ;;  %s495_s27 = int_to_ptr.vmem [resolvable:$false] %s494_s27 }
  0x37   : > { %s496_s29 = scalar_lea.vmem %s495_s27, 192  ;;  %p497_p3 = scmp.lt.s32.totalorder %s708_s28, %s495_s27 }
  0x38   : > { %p492_p4 = pnand %p490_p12, %p476_p2  ;;  %p498_p10 = scmp.lt.s32.totalorder %s496_s29, %s489_s17 }
  0x3a   : > { %p493_p8 = pneg %p492_p4  ;;  %p499_p11 = por %p498_p10, %p497_p3 }
  0x3c   : > { %p500_p5 = pnand %p499_p11, %p493_p8 }
  0x3e   : > { %503 = shalt.err (!%p500_p5)
}
  0x3f   : > { %s594_s30 = smov 32   ;;  %s595_s6 = smov 2  }
  0x40   : > { %397 = dma.hbm_to_vmem [thread:$0]  (!%p679_p0), %s706_s3, 96, %s708_s28, %s715_s5, %s594_s30, %s594_s30, %s595_s6  }
  0x41   : > { %159 = sbr.rel (%p671_p13) target bundleno = 157 (0x9d), region = 28  ;;  %p833_p9 = scmp.ne.s32.totalorder (!%p671_p13), %s827_s18, 0 }
  0x48   : > { %557 = dma.done.wait (%p833_p9), [#allocation5], 32  }
  0x49   : > { %559 = vsyncadd (%p833_p9), [#allocation5], 4294967264  ;;  %s750_s26 = sand.u32 1, %s574_s10   ;;  %p834_p3 = scmp.ne.s32.totalorder %s828_s19, 0 }
  0x4a   : > { %s381_s7 = smul.u32 6, %s750_s26  ;;  %s166_s8 = scalar_lea.sflag [#allocation3], %s750_s26 }
  0x4c   : > { %s169_s15 = scalar_lea.vmem [#allocation6], %s381_s7 }
  0x4d   : > { %561 = dma.done.wait (%p834_p3), %s166_s8, 96  }
  0x4e   : > { %563 = vsyncadd (%p834_p3), %s166_s8, 4294967200 }
  0x4f   : > { %174 = sfence }
  0x50   : > { %v211_v0 = vlaneseq  ;;  %s759_s18 = sshll.u32 %s582_s12, 7  ;;  %v201_v6 = vld [vmem:[%s169_s15] sm:$0x3]  ;;  %v371_v7 = vld [vmem:[%s169_s15 + $0x2] sm:$0x3]  ;;  %s369_s27 = sshll.u32 %s750_s26, 1 }
  0x51   : > { %s193_s22 = sadd.s32 1, %s759_s18  ;;  %s195_s19 = sadd.s32 2, %s759_s18  ;;  %v206_v10 = vmul.f32 0.27, %v201_v6  ;;  %v207_v11 = vmul.f32 0.67, %v371_v7 }
  0x52   : > { %v212_v1 = vshrl.u32 %v211_v0, 7  ;;  %v214_v2 = vand.u32 127, %v211_v0  ;;  %s192_s24 = sld [smem:[#allocation2 + %s759_s18]]  ;;  %v372_v12 = vld [vmem:[%s169_s15 + $0x4] sm:$0x3]  ;;  %s197_s5 = sadd.s32 3, %s759_s18 }
  0x53   : > { %s194_s28 = sld [smem:[#allocation2 + %s193_s22]]  ;;  %v208_v17 = vadd.f32 %v207_v11, %v206_v10  ;;  %v209_v18 = vmul.f32 0.06, %v372_v12  ;;  %s199_s17 = sadd.s32 4, %s759_s18 }
  0x54   : > { %v218_v3 = vmul.u32 128, %v212_v1  ;;  %s196_s3 = sld [smem:[#allocation2 + %s195_s19]]  ;;  %s190_s29 = scalar_lea.vmem [#allocation7], %s369_s27 }
  0x55   : > { %s198_s16 = sld [smem:[#allocation2 + %s197_s5]]  ;;  %v210_v22 = vadd.f32 %v209_v18, %v208_v17  ;;  %s268_s30 = sshll.u32 %s190_s29, 4  ;;  %s768_s30 = int_to_ptr.vmem [resolvable:$true] %s268_s30 }
  0x56   : > { %v219_v4 = vadd.s32 %v218_v3, %v214_v2  ;;  %s200_s23 = sld [smem:[#allocation2 + %s199_s17]]  ;;  %s376_s6 = sshll.u32 %s582_s12, 5 }
  0x57   : > { %s773_s15 = scalar_lea.hbm %s822_s2, %s376_s6  ;;  %s254_s18 = scalar_lea.sflag [#allocation4], %s750_s26 }
  0x58   : > { %v220_v5 = vcvt.s32.f32 %v219_v4  ;;  %v233_v21 = vstv %s192_s24  ;;  %s504_s22 = scalar_lea.vmem %s768_s30, 32  ;;  %p835_p13 = scmp.ne.s32.totalorder %s829_s20, 0 }
  0x59   : > { %v235_v24 = vstv %s194_s28  ;;  %p505_p8 = scmp.ne.s32.totalorder %s768_s30, %s504_s22  ;;  %s596_s12 = smov [#allocation7]  }
  0x5a   : > { %v221_v8 = vmul.f32 0.0625, %v220_v5  ;;  %v238_v25 = vstv %s196_s3  ;;  %s508_s19 = sshll.u32 %s596_s12, 4  ;;  %s509_s19 = int_to_ptr.vmem [resolvable:$false] %s508_s19 }
  0x5b   : > { %v239_v29 = vmul.f32 %v238_v25, %v210_v22  ;;  %v241_v31 = vstv %s198_s16  ;;  %p506_p0 = pnand %p505_p8, %p835_p13  ;;  %s510_s24 = scalar_lea.vmem %s509_s19, 64 }
  0x5c   : > { %v222_v9 = vfloor.f32 %v221_v8  ;;  %v249_v37 = vstv %s200_s23  ;;  %p511_p6 = scmp.lt.s32.totalorder %s768_s30, %s509_s19  ;;  %p512_p1 = scmp.lt.s32.totalorder %s510_s24, %s504_s22 }
  0x5d   : > { %p507_p2 = pneg %p506_p0 }
  0x5e   : > { %v223_v13 = vmul.f32 16.0, %v222_v9  ;;  %v228_v14 = vadd.f32 1.0, %v222_v9  ;;  %v373_v16 = vadd.f32 -1.0, %v222_v9  ;;  %p513_p7 = por %p512_p1, %p511_p6 }
  0x60   : > { %v224_v15 = vsub.f32 %v220_v5, %v223_v13  ;;  %p514_p12 = pnand %p513_p7, %p507_p2 }
  0x62   : > { %vm225_vm0 = vcmp.lt.f32.partialorder %v224_v15, 0.0  ;;  %vm227_vm1 = vcmp.ge.f32.partialorder %v224_v15, 16.0 }
  0x63   : > { %v229_v19 = vsel %vm227_vm1, %v228_v14, %v222_v9 }
  0x64   : > { %v230_v20 = vsel %vm225_vm0, %v373_v16, %v229_v19 }
  0x65   : > { %v231_v23 = vmul.f32 16.0, %v230_v20  ;;  %v234_v27 = vmul.f32 %v233_v21, %v230_v20 }
  0x67   : > { %v232_v26 = vsub.f32 %v220_v5, %v231_v23 }
  0x69   : > { %v236_v28 = vmul.f32 %v235_v24, %v232_v26 }
  0x6b   : > { %v237_v30 = vadd.f32 %v236_v28, %v234_v27 }
  0x6d   : > { %v240_v32 = vadd.f32 %v239_v29, %v237_v30 }
  0x6f   : > { %v242_v33 = vadd.f32 %v241_v31, %v240_v32 }
  0x71   : > { %v374_v34 = vmul.f32 -1.442695, %v242_v33 }
  0x73   : > { %457 = vpow2.f32 %v374_v34 }
  0x7d   : > { %v458_v35 = vpop.eup %457 }
  0x7e   : > { %v246_v36 = vadd.f32 1.0, %v458_v35 }
  0x80   : > { %459 = vrcp.f32 %v246_v36 }
  0x8a   : > { %v460_v38 = vpop.eup %459 }
  0x8b   : > { %v250_v39 = vmul.f32 %v460_v38, %v249_v37 }
  0x8d   : > { %v251_v40 = vadd.f32 0.05, %v250_v39 }
  0x8f   : > { %252 = vst [vmem:[%s190_s29] sm:$0x3] %v251_v40 }
  0x90   : > { %517 = shalt.err (!%p514_p12)
}
  0x91   : > { %s518_s26 = scalar_lea.hbm %s773_s15, 32  ;;  %s522_s5 = scalar_lea.hbm %s822_s2, 64 }
  0x92   : > { %p519_p4 = scmp.ne.s32.totalorder %s773_s15, %s518_s26  ;;  %p523_p5 = scmp.lt.u32.totalorder %s773_s15, %s822_s2 }
  0x93   : > { %p524_p9 = scmp.lt.u32.totalorder %s522_s5, %s518_s26  ;;  %p526_p8 = scmp.lt.u32.totalorder %s518_s26, %s773_s15 }
  0x94   : > { %p520_p10 = pnand %p519_p4, %p835_p13 }
  0x95   : > { %p525_p3 = por %p524_p9, %p523_p5 }
  0x96   : > { %p521_p11 = pneg %p520_p10 }
  0x97   : > { %p527_p0 = por %p526_p8, %p525_p3 }
  0x99   : > { %p528_p2 = pnand %p527_p0, %p521_p11 }
  0x9b   : > { %531 = shalt.err (!%p528_p2)
}
  0x9c   : > { %388 = dma.vmem_to_hbm [thread:$0]  (%p835_p13), %s768_s30, 32, %s773_s15, %s254_s18  }
  0x9d PF: > { %s280_s23 = sand.u32 1, %s570_s9   ;;  %p836_p6 = scmp.ne.s32.totalorder %s830_s21, 0 }
  0x9e   : > { %p837_p1 = scmp.ge.s32.totalorder %s590_s14, 2  ;;  %s281_s27 = scalar_lea.sflag [#allocation4], %s280_s23 }
  0xa0   : > { %p399_p7 = pnand %p837_p1, %p836_p6 }
  0xa2   : > { %565 = dma.done.wait (!%p399_p7), %s281_s27, 32  }
  0xa3   : > { %567 = vsyncadd (!%p399_p7), %s281_s27, 4294967264  ;;  %s19_s14 = sadd.s32 1, %s590_s14   ;;  %s838_s9 = smov %s574_s10 }
  0xa4   : > { %p16_p12 = scmp.ge.s32.totalorder %s19_s14, 4   ;;  %s839_s10 = smov %s578_s11 }
  0xa5   : > { %s840_s11 = smov %s713_s4  ;;  %s841_s12 = smov %s586_s13 }
  0xa6   : > { %s842_s13 = smov %s844_s25  ;;  %18 = sbr.rel (!%p16_p12) target bundleno = 7 (0x7), region = 80 }
  0xad   :  { %286 = vsyncpa [#allocation3], 1 }
  0xae   :  { %288 = vsyncpa [#allocation3 + $0x1], 1 }
  0xaf   :  { %289 = vsyncpa [#allocation4], 1 }
  0xb0   :  { %291 = vsyncpa [#allocation4 + $0x1], 1 }
  0xb1   :  { %292 = vsyncpa [#allocation5], 1 }
  0xb2   :  { %294 = vsyncpa [#allocation5 + $0x1], 1 }

</bundles_post_ra>
